<compile_context>
chip_gen: v6e
topology: v6e:2x2x1
jax: 0.10.0
libtpu: 0.0.40
codegen_flags: <defaults>
</compile_context>

<pallas_src>
import functools

import jax
import jax.numpy as jnp
from jax.experimental import pallas as pl
from jax.experimental.pallas import tpu as pltpu


def _rmsnorm_kernel(x_ref, scale_ref, o_ref, *, inv_dim, precise):
    # x_ref: (tm, dim) block of the input (original dtype)
    # scale_ref: (1, dim) full scale vector, resident across grid steps
    x = x_ref[...].astype(jnp.float32)
    ms = jnp.sum(x * x, axis=-1, keepdims=True) * inv_dim    # sum * (1/dim) == mean
    rrms = jax.lax.rsqrt(ms + 1e-6)                           # EUP slot
    s = scale_ref[...].astype(jnp.float32)
    if precise:
        # Exact torch cast ordering: cast normed value back to org dtype
        # before the scale multiply.
        normed = (x * rrms).astype(x_ref.dtype)
        o_ref[...] = (normed.astype(jnp.float32) * s).astype(o_ref.dtype)
    else:
        # Fused fast path (v7x VPU trim): one broadcast multiply chain,
        # single final cast. Not bit-identical to torch cast ordering.
        o_ref[...] = (x * (rrms * s)).astype(o_ref.dtype)


def _sublane_pack(dtype) -> int:
    # rows per packed 32-bit sublane: f32 -> 8, bf16/f16 -> 16, int8/fp8 -> 32
    return 8 * max(1, 4 // jnp.dtype(dtype).itemsize)


def rms_norm(x: jax.Array, scale: jax.Array, *, block_rows: int | None = None,
             out_dtype=None, precise: bool = True) -> jax.Array:
    """RMSNorm over the last axis of `x` using a Pallas TPU kernel."""
    orig_shape = x.shape
    dim = orig_shape[-1]
    rows = 1
    for s in orig_shape[:-1]:
        rows *= s
    x2d = x.reshape(rows, dim)
    scale2d = scale.reshape(1, dim)

    # Torch promotion: (org_dtype * scale.dtype). Pass out_dtype=x.dtype to
    # force a narrow output if the consumer accepts it.
    if out_dtype is None:
        out_dtype = jnp.promote_types(x.dtype, scale.dtype)

    in_bpe = jnp.dtype(x.dtype).itemsize
    out_bpe = jnp.dtype(out_dtype).itemsize
    pack = max(_sublane_pack(x.dtype), _sublane_pack(out_dtype))

    bytes_per_row = dim * (in_bpe + out_bpe)
    total_bytes = rows * bytes_per_row

    if block_rows is None:
        # ~8 MiB of (in + out) traffic per block: enough to hit the HBM
        # roofline on v5e/v6e/v7x while the double-buffered footprint stays
        # well inside v7x's 64 MiB per-TC VMEM.
        tm = (8 << 20) // max(1, bytes_per_row)
        if total_bytes > (2 << 20):
            # Ensure >= 8 grid steps so the parallel axis shards across both
            # v7x TensorCores and the pipeline has steps to overlap.
            tm = min(tm, pl.cdiv(rows, 8))
    else:
        tm = block_rows

    if tm >= rows:
        tm = rows                                   # full-extent block (always legal)
    else:
        tm = max(pack, (tm // pack) * pack)         # align to sublane packing (>= 8)
        tm = min(tm, rows)
    grid = (pl.cdiv(rows, tm),)                     # ragged tail handled by masking

    # Explicit VMEM budget: double-buffered in+out blocks + scale + headroom,
    # clamped below v7x's 64 MiB physical VMEM per TensorCore.
    tile_bytes = 2 * tm * dim * (in_bpe + out_bpe) + 2 * dim * 4
    vmem_limit = min(int(tile_bytes) + (4 << 20), 56 << 20)

    kernel = functools.partial(_rmsnorm_kernel, inv_dim=float(1.0 / dim),
                               precise=precise)

    out = pl.pallas_call(
        kernel,
        out_shape=jax.ShapeDtypeStruct((rows, dim), out_dtype),
        grid_spec=pl.GridSpec(
            grid=grid,
            in_specs=[
                pl.BlockSpec((tm, dim), lambda i: (i, 0)),
                pl.BlockSpec((1, dim), lambda i: (0, 0)),   # constant block -> resident
            ],
            out_specs=pl.BlockSpec((tm, dim), lambda i: (i, 0)),
        ),
        compiler_params=pltpu.CompilerParams(
            dimension_semantics=("parallel",),
            vmem_limit_bytes=vmem_limit,
        ),
    )(x2d, scale2d)

    return out.reshape(orig_shape[:-1] + (dim,))


def rms_norm_ref(x: jax.Array, scale: jax.Array) -> jax.Array:
    # Pure-JAX reference matching the torch module.
    xf = x.astype(jnp.float32)
    mean = jnp.mean(xf * xf, axis=-1, keepdims=True)
    rrms = jax.lax.rsqrt(mean + 1e-6)
    return (xf * rrms).astype(x.dtype) * scale


if __name__ == "__main__":
    key = jax.random.PRNGKey(0)

    # Case 1: f32 input, f32 ones scale (fresh nn.Parameter(torch.ones(dim))).
    batch, seq, dim = 2, 8, 128
    x = jax.random.normal(key, (batch, seq, dim), dtype=jnp.float32)
    scale = jnp.ones((dim,), dtype=jnp.float32)
    out = rms_norm(x, scale)
    jax.block_until_ready(out)
    ref = rms_norm_ref(x, scale)
    assert out.shape == x.shape and out.dtype == ref.dtype
    assert jnp.allclose(out, ref, atol=1e-5, rtol=1e-5), "f32 mismatch vs reference"

    # Case 2: bf16 input + bf16 scale (real Flux case), ragged rows + forced
    # small row tile: exercises the cdiv grid / masked tail and bf16 output.
    k1, k2 = jax.random.split(jax.random.PRNGKey(1))
    xb = jax.random.normal(k1, (20, dim), dtype=jnp.bfloat16)
    sb = (1.0 + 0.1 * jax.random.normal(k2, (dim,))).astype(jnp.bfloat16)
    outb = rms_norm(xb, sb, block_rows=16)
    jax.block_until_ready(outb)
    refb = rms_norm_ref(xb, sb)
    assert outb.shape == xb.shape and outb.dtype == refb.dtype == jnp.bfloat16
    assert jnp.allclose(outb.astype(jnp.float32), refb.astype(jnp.float32),
                        atol=2e-2, rtol=2e-2), "bf16 ragged mismatch vs reference"

    # Case 3: medium bf16 tensor (4 MiB of traffic) exercising the byte-based
    # auto-tiling with >= 8 grid steps; also check the fused fast path.
    xm = jax.random.normal(jax.random.PRNGKey(2), (8192, dim), dtype=jnp.bfloat16)
    outm = rms_norm(xm, sb)
    outm_fast = rms_norm(xm, sb, precise=False)
    jax.block_until_ready((outm, outm_fast))
    refm = rms_norm_ref(xm, sb).astype(jnp.float32)
    assert outm.dtype == jnp.bfloat16
    assert jnp.allclose(outm.astype(jnp.float32), refm, atol=3e-2, rtol=3e-2)
    assert jnp.allclose(outm_fast.astype(jnp.float32), refm, atol=3e-2, rtol=3e-2)

    print("KERNEL_OK")
</pallas_src>

<mosaic_0001>
module attributes {stable_mosaic.version = 11 : i64} {
  func.func @_rmsnorm_kernel(%arg0: i32, %arg1: memref<16x128xf32, #tpu.memory_space<vmem>>, %arg2: memref<1x128xf32, #tpu.memory_space<vmem>>, %arg3: memref<16x128xf32, #tpu.memory_space<vmem>>) attributes {dimension_semantics = [#tpu.dimension_semantics<parallel>], iteration_bounds = array<i64: 1>, scalar_prefetch = 0 : i64, scratch_operands = 0 : i64, tpu.core_type = #tpu.core_type<tc>, window_params = [{transform_indices = @transform_0, window_bounds = array<i64: 16, 128>}, {pipeline_mode = #tpu.pipeline_mode<synchronous>, transform_indices = @transform_1, window_bounds = array<i64: 1, 128>}, {transform_indices = @transform_2, window_bounds = array<i64: 16, 128>}]} {
    %c0 = arith.constant 0 : index
    %c0_0 = arith.constant 0 : index
    %0 = vector.load %arg1[%c0, %c0_0] : memref<16x128xf32, #tpu.memory_space<vmem>>, vector<16x128xf32>
    %1 = arith.mulf %0, %0 : vector<16x128xf32>
    %cst = arith.constant dense<0.000000e+00> : vector<16xf32>
    %2 = vector.multi_reduction <add>, %1, %cst [1] : vector<16x128xf32> to vector<16xf32>
    %3 = vector.shape_cast %2 : vector<16xf32> to vector<16x1xf32>
    %cst_1 = arith.constant 7.812500e-03 : f32
    %4 = vector.broadcast %cst_1 : f32 to vector<16x1xf32>
    %5 = arith.mulf %3, %4 : vector<16x1xf32>
    %cst_2 = arith.constant 9.99999997E-7 : f32
    %6 = vector.broadcast %cst_2 : f32 to vector<16x1xf32>
    %7 = arith.addf %5, %6 : vector<16x1xf32>
    %8 = math.rsqrt %7 : vector<16x1xf32>
    %c0_3 = arith.constant 0 : index
    %c0_4 = arith.constant 0 : index
    %9 = vector.load %arg2[%c0_3, %c0_4] : memref<1x128xf32, #tpu.memory_space<vmem>>, vector<1x128xf32>
    %10 = vector.broadcast %8 : vector<16x1xf32> to vector<16x128xf32>
    %11 = arith.mulf %0, %10 : vector<16x128xf32>
    %12 = vector.broadcast %9 : vector<1x128xf32> to vector<16x128xf32>
    %13 = arith.mulf %11, %12 : vector<16x128xf32>
    %c0_5 = arith.constant 0 : index
    %c0_6 = arith.constant 0 : index
    %14 = vector.load %arg3[%c0_5, %c0_6] : memref<16x128xf32, #tpu.memory_space<vmem>>, vector<16x128xf32>
    tpu.vector_store %arg3[%c0_5, %c0_6], %13 {strides = array<i32>} : memref<16x128xf32, #tpu.memory_space<vmem>>, vector<16x128xf32>,
    return
  }
  func.func @transform_0(%arg0: i32) -> (i32, i32) {
    %c0_i32 = arith.constant 0 : i32
    %c0_i32_0 = arith.constant 0 : i32
    return %arg0, %c0_i32 : i32, i32
  }
  func.func @transform_1(%arg0: i32) -> (i32, i32) {
    %c0_i32 = arith.constant 0 : i32
    %c0_i32_0 = arith.constant 0 : i32
    %c0_i32_1 = arith.constant 0 : i32
    return %c0_i32, %c0_i32_0 : i32, i32
  }
  func.func @transform_2(%arg0: i32) -> (i32, i32) {
    %c0_i32 = arith.constant 0 : i32
    %c0_i32_0 = arith.constant 0 : i32
    return %arg0, %c0_i32 : i32, i32
  }
}

</mosaic_0001>

<bundles_post_ra>
// kernel: tpu_custom_call.1
= control target key start
LH: loop header
LB: loop body
LE: loop exit
PB: predicated region body
PF: predicated region fallthrough
CT: control target
= control target key end

     0   :  { %7 = vsyncpa [#allocation3], 0  ;;  %s157_s0 = inlined_call_operand.hbm [shape: f32[16,128], index: 0, kind: input, shape index: {}]   ;;  %s158_s1 = inlined_call_operand.vmem [shape: f32[1,128], index: 1, kind: input, shape index: {}]   ;;  %s159_s2 = inlined_call_operand.hbm [shape: f32[16,128], index: 2, kind: output, shape index: {}]  }
   0x1   :  { %8 = vsyncpa [#allocation4], 0  ;;  %s123_s9 = smov [#allocation2]  }
   0x2   :  { %s14_s10 = sshll.u32 %s123_s9, 4  ;;  %s15_s10 = int_to_ptr.vmem [resolvable:$true] %s14_s10 }
   0x3   :  { %s87_s11 = scalar_lea.vmem %s15_s10, 256  ;;  %p92_p1 = scmp.lt.s32.totalorder %s15_s10, %s15_s10 }
   0x4   :  { %p88_p0 = scmp.ne.s32.totalorder %s15_s10, %s87_s11  ;;  %p93_p2 = scmp.lt.s32.totalorder %s87_s11, %s87_s11 }
   0x6   :  { %p94_p3 = por %p93_p2, %p92_p1 }
   0x8   :  { %p95_p4 = pnand %p94_p3, %p88_p0 }
   0xa   :  { %98 = shalt.err (!%p95_p4)
}
   0xb   :  { %s124_s12 = smov 128   ;;  %s125_s13 = smov 8  }
   0xc   :  { %20 = dma.hbm_to_vmem [thread:$0]  %s157_s0, 256, %s15_s10, [#allocation3], %s124_s12, %s124_s12, %s125_s13  }
   0xd   :  { %119 = dma.done.wait [#allocation3], 256  }
   0xe   :  { %120 = vsyncadd [#allocation3], 4294967040  ;;  %v26_v0 = vld [vmem:[#allocation2] sm:$0xff]  ;;  %v27_v1 = vld [vmem:[#allocation2 + $0x8] sm:$0xff]  ;;  %s126_s0 = smov [#allocation5]  }
   0xf   :  { %v28_v2 = vmul.f32 %v26_v0, %v26_v0  ;;  %v29_v3 = vmul.f32 %v27_v1, %v27_v1  ;;  %v70_v11 = vld [vmem:[%s158_s1] ss:$0 sm:$0xff]  ;;  %s58_s18 = sshll.u32 %s126_s0, 4  ;;  %s59_s18 = int_to_ptr.vmem [resolvable:$true] %s58_s18 }
  0x10   :  { %s99_s19 = scalar_lea.vmem %s59_s18, 256  ;;  %p104_p6 = scmp.lt.s32.totalorder %s59_s18, %s59_s18 }
  0x11   :  { %30 = vadd.xlane.f32.xlu0 %v28_v2  ;;  %p100_p5 = scmp.ne.s32.totalorder %s59_s18, %s99_s19  ;;  %p105_p7 = scmp.lt.s32.totalorder %s99_s19, %s99_s19 }
  0x13   :  { %p106_p8 = por %p105_p7, %p104_p6 }
  0x15   :  { %32 = vadd.xlane.f32.xlu0 %v29_v3  ;;  %p107_p9 = pnand %p106_p8, %p100_p5 }
  0x9a   :  { %v31_v4 = vpop.xlane.xlu0 %30 }
  0x9b   :  { %v34_v5 = vmul.f32 0.0078125, %v31_v4 }
  0x9d   :  { %v36_v6 = vadd.f32 1e-06, %v34_v5 }
  0x9e   :  { %v33_v7 = vpop.xlane.xlu0 %32 }
  0x9f   :  { %75 = vrsqrt.f32 %v36_v6  ;;  %v35_v8 = vmul.f32 0.0078125, %v33_v7 }
  0xa1   :  { %v37_v9 = vadd.f32 1e-06, %v35_v8 }
  0xa3   :  { %77 = vrsqrt.f32 %v37_v9 }
  0xac   :  { %v76_v10 = vpop.eup %75 }
  0xad   :  { %v41_v12 = vmul.f32 %v76_v10, %v26_v0 }
  0xaf   :  { %v49_v13 = vmul.f32 %v70_v11, %v41_v12 }
  0xb0   :  { %v78_v14 = vpop.eup %77 }
  0xb1   :  { %v42_v15 = vmul.f32 %v78_v14, %v27_v1  ;;  %51 = vst [vmem:[#allocation5] sm:$0xff] %v49_v13 }
  0xb3   :  { %v50_v16 = vmul.f32 %v70_v11, %v42_v15 }
  0xb5   :  { %52 = vst [vmem:[#allocation5 + $0x8] sm:$0xff] %v50_v16 }
  0xb6   :  { %110 = shalt.err (!%p107_p9)
}
  0xb7   :  { %64 = dma.vmem_to_hbm [thread:$0]  %s59_s18, 256, %s159_s2, [#allocation4], %s124_s12, %s124_s12, %s125_s13  }
  0xb8   :  { %121 = dma.done.wait [#allocation4], 256  }
  0xb9   :  { %122 = vsyncadd [#allocation4], 4294967040 }
  0xba   :  { %68 = vsyncpa [#allocation3], 1 }
  0xbb   :  { %69 = vsyncpa [#allocation4], 1 }

</bundles_post_ra>
